<compile_context>
chip_gen: v7x
topology: tpu7x:2x2x1
jax: 0.10.0
libtpu: 0.0.40
codegen_flags: <defaults>
</compile_context>

<pallas_src>
import math

import jax
import jax.numpy as jnp
from jax.experimental import pallas as pl
from jax.experimental.pallas import tpu as pltpu

_LANES = 128
_SUBLANES = 8
_SUB_ROWS = 256                     # rows per in-kernel sub-chunk (bounds f32 temps)
_PAD_UNIT = _LANES * _SUBLANES      # 1024 voxels: keeps the row count a multiple of 8
_MAX_ROWS_CAP = 8192                # ~16 MiB f32 logits / step at C=4; diminishing returns


def _vmem_budget_bytes():
    """3/4 of physical VMEM (64 MiB fallback); used for tiling and vmem_limit_bytes."""
    try:
        cap = getattr(pltpu.get_tpu_info(), "vmem_capacity_bytes", None)
    except Exception:
        cap = None
    if not cap or cap <= 0:
        cap = 64 * 1024 * 1024
    return (int(cap) * 3) // 4


def _max_tile_rows(num_classes, logit_itemsize, vmem_budget):
    """Largest row tile (multiple of 256) whose VMEM footprint fits the budget.

    Model: double-buffered native-dtype input tiles + ~4 f32 element-wise
    temporaries bounded to a _SUB_ROWS chunk + the resident accumulator block.
    """
    bytes_per_row = 2 * (num_classes * _LANES * logit_itemsize + _LANES * 4)
    fixed = (4 * num_classes * _LANES * 4 * _SUB_ROWS
             + 3 * num_classes * _SUBLANES * _LANES * 4)
    avail = (vmem_budget * 7) // 10 - fixed
    rows = max(_SUB_ROWS, int(avail) // bytes_per_row)
    rows = (rows // _SUB_ROWS) * _SUB_ROWS
    return max(_SUB_ROWS, min(rows, _MAX_ROWS_CAP))


def _choose_row_tile(num_rows, max_rows):
    """Row tile: full extent for small inputs, else a big multiple of 256 rows.

    R does NOT need to be divisible by the tile (the kernel masks the partial
    last tile), so an awkward row count never falls back to a tiny tile.
    """
    if num_rows <= 2 * _SUB_ROWS and num_rows <= max_rows:
        return num_rows
    # Aim for >= ~4 pipeline steps (also feeds the v7x core split) without
    # exceeding the VMEM-derived cap or the array extent.
    target = min(max_rows, max(_SUB_ROWS, (num_rows + 3) // 4))
    tr = max(_SUB_ROWS, (target // _SUB_ROWS) * _SUB_ROWS)
    return min(tr, (num_rows // _SUB_ROWS) * _SUB_ROWS)


def _make_dice_kernel(C, R, tr, nh, nsteps, needs_mask):
    """Build the kernel for grid (batch, core_split, row_tile)."""
    if tr % _SUB_ROWS == 0 and tr > _SUB_ROWS:
        n_sub, sub = tr // _SUB_ROWS, _SUB_ROWS
    else:
        n_sub, sub = 1, tr
    groups = sub // _SUBLANES

    def kernel(logits_ref, targets_ref, out_ref):
        # logits_ref : (C, tr, 128) native dtype (f32 / bf16)
        # targets_ref: (tr, 128)    int32 labels (-1 = padding)
        # out_ref    : (3*C, 8, 128) f32, resident across the row-tile axis
        p_core = pl.program_id(1)
        s_step = pl.program_id(2)

        @pl.when(s_step == 0)
        def _():
            out_ref[...] = jnp.zeros_like(out_ref)

        # Unclamped global row of this tile's first row.  The DMA index map is
        # clamped, but the mask uses the unclamped value so phantom rows give a
        # zero one-hot and exactly 1/C prob mass (corrected in the wrapper).
        tile_row0 = (p_core * nh + s_step) * tr

        def accumulate(row0, x, t):
            # x: (C, sub, 128) f32 logits ; t: (sub, 128) int32 labels
            if needs_mask:
                rows = row0 + jax.lax.broadcasted_iota(jnp.int32, (sub, _LANES), 0)
                ok = rows < R
                x = jnp.where(ok[None], x, 0.0)    # phantom rows -> uniform softmax
                t = jnp.where(ok, t, -1)           # phantom rows -> no one-hot hit

            # Softmax over the leading (cross-vreg) class axis.
            m = jnp.max(x, axis=0, keepdims=True)
            e = jnp.exp(x - m)
            den = jnp.sum(e, axis=0, keepdims=True)
            inv = pl.reciprocal(den, approx=True)
            inv = inv * (2.0 - den * inv)          # one Newton step: kills approx bias
            prob = e * inv                         # (C, sub, 128)

            cls = jax.lax.broadcasted_iota(jnp.int32, (C, sub, _LANES), 0)
            eq = cls == t[None]                    # one-hot as a predicate only

            def grp(v):                            # (C, sub, 128) -> (C, 8, 128): vreg adds
                return v.reshape(C, groups, _SUBLANES, _LANES).sum(axis=1)

            out_ref[0:C] += grp(jnp.where(eq, prob, 0.0))         # intersection
            out_ref[C:2 * C] += grp(prob)                         # softmax-prob sum
            out_ref[2 * C:3 * C] += grp(jnp.where(eq, 1.0, 0.0))  # one-hot count

        if n_sub == 1:
            accumulate(tile_row0,
                       logits_ref[...].astype(jnp.float32),
                       targets_ref[...].astype(jnp.int32))
        else:
            # Sub-chunk loop bounds the f32 temporaries while keeping the big DMA tile.
            def body(j, carry):
                r0 = pl.multiple_of(j * sub, sub)
                accumulate(tile_row0 + r0,
                           logits_ref[:, pl.ds(r0, sub), :].astype(jnp.float32),
                           targets_ref[pl.ds(r0, sub), :].astype(jnp.int32))
                return carry

            jax.lax.fori_loop(0, n_sub, body, 0, unroll=True)

    return kernel


def _dice_micro_stats(logits_4d, targets_3d, num_voxels):
    """logits_4d (B,C,R,128), targets_3d (B,R,128) int32 -> (inter, psum, osum) each (B,C)."""
    B, C, R, L = logits_4d.shape
    assert L == _LANES and targets_3d.shape == (B, R, _LANES)
    assert R % _SUBLANES == 0

    vmem_budget = _vmem_budget_bytes()
    max_rows = _max_tile_rows(C, jnp.dtype(logits_4d.dtype).itemsize, vmem_budget)
    tr = _choose_row_tile(R, max_rows)
    nsteps = -(-R // tr)
    n_par = 2 if nsteps >= 2 else 1        # keep both v7x TensorCores busy even at B == 1
    nh = -(-nsteps // n_par)
    total_rows = n_par * nh * tr           # rows processed per batch, incl. phantoms
    needs_mask = total_rows > R

    def logits_index(b, p, s):
        return (b, 0, jnp.minimum(p * nh + s, nsteps - 1), 0)

    def targets_index(b, p, s):
        return (b, jnp.minimum(p * nh + s, nsteps - 1), 0)

    def out_index(b, p, s):
        return (b * n_par + p, 0, 0, 0)

    kernel = _make_dice_kernel(C, R, tr, nh, nsteps, needs_mask)

    partials = pl.pallas_call(
        kernel,
        out_shape=jax.ShapeDtypeStruct((B * n_par, 3 * C, _SUBLANES, _LANES), jnp.float32),
        grid_spec=pltpu.PrefetchScalarGridSpec(
            num_scalar_prefetch=0,
            grid=(B, n_par, nh),
            in_specs=[
                pl.BlockSpec((None, C, tr, _LANES), logits_index),
                pl.BlockSpec((None, tr, _LANES), targets_index),
            ],
            out_specs=pl.BlockSpec((None, 3 * C, _SUBLANES, _LANES), out_index),
        ),
        compiler_params=pltpu.CompilerParams(
            dimension_semantics=("parallel", "parallel", "arbitrary"),
            vmem_limit_bytes=int(vmem_budget),
        ),
    )(logits_4d, targets_3d)

    stats = partials.reshape(B, n_par, 3, C, _SUBLANES * _LANES).sum(axis=(1, 4))
    intersection = stats[:, 0]
    # Padded / phantom voxels carry zero logits and label -1: each adds exactly
    # 1/C to every class's prob sum and nothing else -> subtract that constant.
    probs_sum = stats[:, 1] - (total_rows * _LANES - num_voxels) / float(C)
    onehot_sum = stats[:, 2]
    return intersection, probs_sum, onehot_sum


class DiceLoss:
    """JAX/Pallas port of the PyTorch DiceLoss module (forward pass)."""

    def __init__(self, smooth=1e-06, reduction="micro"):
        self.smooth = smooth
        self.reduction = reduction
        if reduction == "macro":
            # deterministic init matching nn.Parameter(torch.tensor([0.5, 0.5, 0.1]))
            self.weights = jnp.array([0.5, 0.5, 0.1], dtype=jnp.float32)
        else:
            self.weights = None

    def __call__(self, logits, targets):
        if self.reduction == "micro":
            B, C = logits.shape[0], logits.shape[1]
            S = math.prod(logits.shape[2:])

            S_pad = -(-S // _PAD_UNIT) * _PAD_UNIT
            R = S_pad // _LANES

            logits_flat = logits.reshape(B, C, S)
            targets_flat = targets.reshape(B, S)
            if targets_flat.dtype != jnp.int32:
                targets_flat = targets_flat.astype(jnp.int32)
            if S_pad != S:
                # Ragged spatial size: a single minimal padding pass (labels padded
                # with -1 never hit a one-hot class).  Aligned inputs (S % 1024 == 0)
                # skip this entirely: the reshapes below are metadata-only.
                logits_flat = jnp.pad(
                    logits_flat, ((0, 0), (0, 0), (0, S_pad - S)))
                targets_flat = jnp.pad(
                    targets_flat, ((0, 0), (0, S_pad - S)), constant_values=-1)

            logits_4d = logits_flat.reshape(B, C, R, _LANES)
            targets_3d = targets_flat.reshape(B, R, _LANES)

            intersection, probs_sum, onehot_sum = _dice_micro_stats(
                logits_4d, targets_3d, S)

            union = probs_sum + onehot_sum
            dice_scores = (2.0 * intersection + self.smooth) / (union + self.smooth)
            dice = jnp.sum(dice_scores) / (C * B)
            valid_classes = onehot_sum > 0
            dice_loss = 1.0 - jnp.sum(dice_scores * valid_classes) / (
                jnp.sum(valid_classes) + 1e-08)
            return (dice_loss, dice, dice, dice)
        elif self.reduction in ("macro", "target"):
            # TODO(synk): depends on external `cal_dice` not defined in the module.
            raise NotImplementedError(
                "'macro'/'target' reductions require the external cal_dice()")
        else:
            raise ValueError(f"Unsupported reduction: {self.reduction}")


def _reference_micro(logits, targets, smooth=1e-06):
    """Pure-JAX reference of the PyTorch 'micro' branch (for verification)."""
    num_classes = logits.shape[1]
    probs = jax.nn.softmax(logits.astype(jnp.float32), axis=1)
    onehot = jax.nn.one_hot(targets, num_classes, dtype=jnp.float32)
    onehot = jnp.transpose(onehot, (0, 4, 1, 2, 3))
    intersection = jnp.sum(probs * onehot, axis=(2, 3, 4))
    union = jnp.sum(probs + onehot, axis=(2, 3, 4))
    dice_scores = (2.0 * intersection + smooth) / (union + smooth)
    dice = jnp.sum(dice_scores) / (num_classes * targets.shape[0])
    valid = jnp.sum(onehot, axis=(2, 3, 4)) > 0
    dice_loss = 1.0 - jnp.sum(dice_scores * valid) / (jnp.sum(valid) + 1e-08)
    return dice_loss, dice


if __name__ == "__main__":
    key = jax.random.PRNGKey(0)
    k1, k2, k3, k4, k5, k6 = jax.random.split(key, 6)

    loss_fn = DiceLoss(reduction="micro")

    # Test 1: f32 logits, S = 2048 (aligned, zero-copy path, single resident tile).
    B, C, D, H, W = 2, 4, 8, 16, 16
    logits = jax.random.normal(k1, (B, C, D, H, W), dtype=jnp.float32)
    targets = jax.random.randint(k2, (B, D, H, W), 0, C, dtype=jnp.int32)
    dice_loss, dice, _, _ = loss_fn(logits, targets)
    jax.block_until_ready(dice_loss)
    ref_loss, ref_dice = _reference_micro(logits, targets)
    assert jnp.allclose(dice_loss, ref_loss, atol=2e-3), (dice_loss, ref_loss)
    assert jnp.allclose(dice, ref_dice, atol=2e-3), (dice, ref_dice)

    # Test 2: bf16 logits + ragged spatial size (minimal pad path, -1 label fill).
    B2, C2, D2, H2, W2 = 2, 4, 5, 9, 7
    logits2 = jax.random.normal(k3, (B2, C2, D2, H2, W2), dtype=jnp.bfloat16)
    targets2 = jax.random.randint(k4, (B2, D2, H2, W2), 0, C2, dtype=jnp.int32)
    dl2, d2, _, _ = loss_fn(logits2, targets2)
    jax.block_until_ready(dl2)
    rl2, rd2 = _reference_micro(logits2, targets2)
    assert jnp.allclose(dl2, rl2, atol=2e-3), (dl2, rl2)
    assert jnp.allclose(d2, rd2, atol=2e-3), (d2, rd2)

    # Test 3: B=1 aligned volume exercising the multi-step pipeline, the core
    # split, the non-divisor row tile + masked phantom tile, and the unrolled
    # sub-chunk loop (R = 2056, tr = 512, 5 real steps split across 2x3 cells).
    B3, C3, D3, H3, W3 = 1, 3, 257, 32, 32
    logits3 = jax.random.normal(k5, (B3, C3, D3, H3, W3), dtype=jnp.bfloat16)
    targets3 = jax.random.randint(k6, (B3, D3, H3, W3), 0, C3, dtype=jnp.int32)
    dl3, d3, _, _ = loss_fn(logits3, targets3)
    jax.block_until_ready(dl3)
    rl3, rd3 = _reference_micro(logits3, targets3)
    assert jnp.allclose(dl3, rl3, atol=2e-3), (dl3, rl3)
    assert jnp.allclose(d3, rd3, atol=2e-3), (d3, rd3)

    print("KERNEL_OK")
</pallas_src>

<mosaic_0001>
module attributes {stable_mosaic.version = 11 : i64} {
  func.func @kernel(%arg0: i32, %arg1: i32, %arg2: i32, %arg3: memref<1x4x16x128xf32, #tpu.memory_space<vmem>>, %arg4: memref<1x16x128xi32, #tpu.memory_space<vmem>>, %arg5: memref<1x12x8x128xf32, #tpu.memory_space<vmem>>) attributes {dimension_semantics = [#tpu.dimension_semantics<parallel>, #tpu.dimension_semantics<parallel>, #tpu.dimension_semantics<arbitrary>], iteration_bounds = array<i64: 2, 1, 1>, scalar_prefetch = 0 : i64, scratch_operands = 0 : i64, tpu.core_type = #tpu.core_type<tc>, window_params = [{transform_indices = @transform_0, window_bounds = array<i64: 1, 4, 16, 128>}, {transform_indices = @transform_1, window_bounds = array<i64: 1, 16, 128>}, {transform_indices = @transform_2, window_bounds = array<i64: 1, 12, 8, 128>}]} {
    %c0_i32 = arith.constant 0 : i32
    %0 = arith.cmpi eq, %arg2, %c0_i32 : i32
    %1 = arith.extui %0 : i1 to i32
    %c0_i32_0 = arith.constant 0 : i32
    %2 = arith.cmpi ne, %1, %c0_i32_0 : i32
    scf.if %2 {
      %cst_37 = arith.constant 0.000000e+00 : f32
      %54 = vector.broadcast %cst_37 : f32 to vector<12x8x128xf32>
      %c0_38 = arith.constant 0 : index
      %c0_39 = arith.constant 0 : index
      %c0_40 = arith.constant 0 : index
      %c0_41 = arith.constant 0 : index
      %55 = vector.load %arg5[%c0_38, %c0_39, %c0_40, %c0_41] : memref<1x12x8x128xf32, #tpu.memory_space<vmem>>, vector<1x12x8x128xf32>
      %56 = vector.shape_cast %55 : vector<1x12x8x128xf32> to vector<12x8x128xf32>
      %57 = vector.shape_cast %54 : vector<12x8x128xf32> to vector<1x12x8x128xf32>
      tpu.vector_store %arg5[%c0_38, %c0_39, %c0_40, %c0_41], %57 {strides = array<i32>} : memref<1x12x8x128xf32, #tpu.memory_space<vmem>>, vector<1x12x8x128xf32>,
    } else {
    }
    %c0 = arith.constant 0 : index
    %c0_1 = arith.constant 0 : index
    %c0_2 = arith.constant 0 : index
    %c0_3 = arith.constant 0 : index
    %3 = vector.load %arg3[%c0, %c0_1, %c0_2, %c0_3] : memref<1x4x16x128xf32, #tpu.memory_space<vmem>>, vector<1x4x16x128xf32>
    %4 = vector.shape_cast %3 : vector<1x4x16x128xf32> to vector<4x16x128xf32>
    %c0_4 = arith.constant 0 : index
    %c0_5 = arith.constant 0 : index
    %c0_6 = arith.constant 0 : index
    %5 = vector.load %arg4[%c0_4, %c0_5, %c0_6] : memref<1x16x128xi32, #tpu.memory_space<vmem>>, vector<1x16x128xi32>
    %6 = vector.shape_cast %5 : vector<1x16x128xi32> to vector<16x128xi32>
    %cst = arith.constant dense<0xFF800000> : vector<16x128xf32>
    %7 = vector.multi_reduction <maximumf>, %4, %cst [0] : vector<4x16x128xf32> to vector<16x128xf32>
    %8 = vector.shape_cast %7 : vector<16x128xf32> to vector<1x16x128xf32>
    %9 = vector.broadcast %8 : vector<1x16x128xf32> to vector<4x16x128xf32>
    %10 = arith.subf %4, %9 : vector<4x16x128xf32>
    %11 = math.exp %10 : vector<4x16x128xf32>
    %cst_7 = arith.constant dense<0.000000e+00> : vector<16x128xf32>
    %12 = vector.multi_reduction <add>, %11, %cst_7 [0] : vector<4x16x128xf32> to vector<16x128xf32>
    %13 = vector.shape_cast %12 : vector<16x128xf32> to vector<1x16x128xf32>
    %14 = tpu.reciprocal %13 {approx = true} : vector<1x16x128xf32> -> vector<1x16x128xf32>
    %15 = arith.mulf %13, %14 : vector<1x16x128xf32>
    %cst_8 = arith.constant 2.000000e+00 : f32
    %16 = vector.broadcast %cst_8 : f32 to vector<1x16x128xf32>
    %17 = arith.subf %16, %15 : vector<1x16x128xf32>
    %18 = arith.mulf %14, %17 : vector<1x16x128xf32>
    %19 = vector.broadcast %18 : vector<1x16x128xf32> to vector<4x16x128xf32>
    %20 = arith.mulf %11, %19 : vector<4x16x128xf32>
    %21 = tpu.iota {dimensions = array<i32: 0>} : vector<4x16x128xi32>
    %22 = vector.shape_cast %6 : vector<16x128xi32> to vector<1x16x128xi32>
    %23 = vector.broadcast %22 : vector<1x16x128xi32> to vector<4x16x128xi32>
    %24 = arith.cmpi eq, %21, %23 : vector<4x16x128xi32>
    %c0_9 = arith.constant 0 : index
    %c0_10 = arith.constant 0 : index
    %c0_11 = arith.constant 0 : index
    %c0_12 = arith.constant 0 : index
    %25 = vector.load %arg5[%c0_9, %c0_10, %c0_11, %c0_12] : memref<1x12x8x128xf32, #tpu.memory_space<vmem>>, vector<1x4x8x128xf32>
    %26 = vector.shape_cast %25 : vector<1x4x8x128xf32> to vector<4x8x128xf32>
    %cst_13 = arith.constant 0.000000e+00 : f32
    %27 = vector.broadcast %cst_13 : f32 to vector<4x16x128xf32>
    %28 = arith.select %24, %20, %27 : vector<4x16x128xi1>, vector<4x16x128xf32>
    %29 = vector.shape_cast %28 : vector<4x16x128xf32> to vector<4x2x8x128xf32>
    %cst_14 = arith.constant dense<0.000000e+00> : vector<4x8x128xf32>
    %30 = vector.multi_reduction <add>, %29, %cst_14 [1] : vector<4x2x8x128xf32> to vector<4x8x128xf32>
    %31 = arith.addf %26, %30 : vector<4x8x128xf32>
    %c0_15 = arith.constant 0 : index
    %c0_16 = arith.constant 0 : index
    %c0_17 = arith.constant 0 : index
    %c0_18 = arith.constant 0 : index
    %32 = vector.load %arg5[%c0_15, %c0_16, %c0_17, %c0_18] : memref<1x12x8x128xf32, #tpu.memory_space<vmem>>, vector<1x4x8x128xf32>
    %33 = vector.shape_cast %32 : vector<1x4x8x128xf32> to vector<4x8x128xf32>
    %34 = vector.shape_cast %31 : vector<4x8x128xf32> to vector<1x4x8x128xf32>
    tpu.vector_store %arg5[%c0_15, %c0_16, %c0_17, %c0_18], %34 {strides = array<i32>} : memref<1x12x8x128xf32, #tpu.memory_space<vmem>>, vector<1x4x8x128xf32>,
    %c0_19 = arith.constant 0 : index
    %c4 = arith.constant 4 : index
    %c0_20 = arith.constant 0 : index
    %c0_21 = arith.constant 0 : index
    %35 = vector.load %arg5[%c0_19, %c4, %c0_20, %c0_21] : memref<1x12x8x128xf32, #tpu.memory_space<vmem>>, vector<1x4x8x128xf32>
    %36 = vector.shape_cast %35 : vector<1x4x8x128xf32> to vector<4x8x128xf32>
    %37 = vector.shape_cast %20 : vector<4x16x128xf32> to vector<4x2x8x128xf32>
    %cst_22 = arith.constant dense<0.000000e+00> : vector<4x8x128xf32>
    %38 = vector.multi_reduction <add>, %37, %cst_22 [1] : vector<4x2x8x128xf32> to vector<4x8x128xf32>
    %39 = arith.addf %36, %38 : vector<4x8x128xf32>
    %c0_23 = arith.constant 0 : index
    %c4_24 = arith.constant 4 : index
    %c0_25 = arith.constant 0 : index
    %c0_26 = arith.constant 0 : index
    %40 = vector.load %arg5[%c0_23, %c4_24, %c0_25, %c0_26] : memref<1x12x8x128xf32, #tpu.memory_space<vmem>>, vector<1x4x8x128xf32>
    %41 = vector.shape_cast %40 : vector<1x4x8x128xf32> to vector<4x8x128xf32>
    %42 = vector.shape_cast %39 : vector<4x8x128xf32> to vector<1x4x8x128xf32>
    tpu.vector_store %arg5[%c0_23, %c4_24, %c0_25, %c0_26], %42 {strides = array<i32>} : memref<1x12x8x128xf32, #tpu.memory_space<vmem>>, vector<1x4x8x128xf32>,
    %c0_27 = arith.constant 0 : index
    %c8 = arith.constant 8 : index
    %c0_28 = arith.constant 0 : index
    %c0_29 = arith.constant 0 : index
    %43 = vector.load %arg5[%c0_27, %c8, %c0_28, %c0_29] : memref<1x12x8x128xf32, #tpu.memory_space<vmem>>, vector<1x4x8x128xf32>
    %44 = vector.shape_cast %43 : vector<1x4x8x128xf32> to vector<4x8x128xf32>
    %cst_30 = arith.constant 1.000000e+00 : f32
    %cst_31 = arith.constant 0.000000e+00 : f32
    %45 = vector.broadcast %cst_30 : f32 to vector<4x16x128xf32>
    %46 = vector.broadcast %cst_31 : f32 to vector<4x16x128xf32>
    %47 = arith.select %24, %45, %46 : vector<4x16x128xi1>, vector<4x16x128xf32>
    %48 = vector.shape_cast %47 : vector<4x16x128xf32> to vector<4x2x8x128xf32>
    %cst_32 = arith.constant dense<0.000000e+00> : vector<4x8x128xf32>
    %49 = vector.multi_reduction <add>, %48, %cst_32 [1] : vector<4x2x8x128xf32> to vector<4x8x128xf32>
    %50 = arith.addf %44, %49 : vector<4x8x128xf32>
    %c0_33 = arith.constant 0 : index
    %c8_34 = arith.constant 8 : index
    %c0_35 = arith.constant 0 : index
    %c0_36 = arith.constant 0 : index
    %51 = vector.load %arg5[%c0_33, %c8_34, %c0_35, %c0_36] : memref<1x12x8x128xf32, #tpu.memory_space<vmem>>, vector<1x4x8x128xf32>
    %52 = vector.shape_cast %51 : vector<1x4x8x128xf32> to vector<4x8x128xf32>
    %53 = vector.shape_cast %50 : vector<4x8x128xf32> to vector<1x4x8x128xf32>
    tpu.vector_store %arg5[%c0_33, %c8_34, %c0_35, %c0_36], %53 {strides = array<i32>} : memref<1x12x8x128xf32, #tpu.memory_space<vmem>>, vector<1x4x8x128xf32>,
    return
  }
  func.func @transform_0(%arg0: i32, %arg1: i32, %arg2: i32) -> (i32, i32, i32, i32) {
    %c1_i32 = arith.constant 1 : i32
    %0 = arith.muli %arg1, %c1_i32 : i32
    %1 = arith.addi %0, %arg2 : i32
    %c0_i32 = arith.constant 0 : i32
    %2 = arith.minsi %1, %c0_i32 : i32
    %c0_i32_0 = arith.constant 0 : i32
    %c0_i32_1 = arith.constant 0 : i32
    %c0_i32_2 = arith.constant 0 : i32
    return %arg0, %c0_i32_0, %2, %c0_i32_1 : i32, i32, i32, i32
  }
  func.func @transform_1(%arg0: i32, %arg1: i32, %arg2: i32) -> (i32, i32, i32) {
    %c1_i32 = arith.constant 1 : i32
    %0 = arith.muli %arg1, %c1_i32 : i32
    %1 = arith.addi %0, %arg2 : i32
    %c0_i32 = arith.constant 0 : i32
    %2 = arith.minsi %1, %c0_i32 : i32
    %c0_i32_0 = arith.constant 0 : i32
    %c0_i32_1 = arith.constant 0 : i32
    return %arg0, %2, %c0_i32_0 : i32, i32, i32
  }
  func.func @transform_2(%arg0: i32, %arg1: i32, %arg2: i32) -> (i32, i32, i32, i32) {
    %c1_i32 = arith.constant 1 : i32
    %0 = arith.muli %arg0, %c1_i32 : i32
    %1 = arith.addi %0, %arg1 : i32
    %c0_i32 = arith.constant 0 : i32
    %c0_i32_0 = arith.constant 0 : i32
    %c0_i32_1 = arith.constant 0 : i32
    %c0_i32_2 = arith.constant 0 : i32
    return %1, %c0_i32, %c0_i32_0, %c0_i32_1 : i32, i32, i32, i32
  }
}

</mosaic_0001>

<bundles_post_ra>
// kernel: tpu_custom_call.1
= control target key start
LH: loop header
LB: loop body
LE: loop exit
PB: predicated region body
PF: predicated region fallthrough
CT: control target
= control target key end

     0   :  { %7 = vsyncpa [#allocation3], 0  ;;  %s1129_s0 = inlined_call_operand.hbm [shape: f32[2,4,16,128], index: 0, kind: input, shape index: {}]   ;;  %s1130_s1 = inlined_call_operand.hbm [shape: s32[2,16,128], index: 1, kind: input, shape index: {}]   ;;  %s1131_s2 = inlined_call_operand.hbm [shape: f32[2,12,8,128], index: 2, kind: output, shape index: {}]  }
   0x1   :  { %9 = vsyncpa [#allocation3 + $0x1], 0 }
   0x2   :  { %10 = vsyncpa [#allocation6], 0 }
   0x3   :  { %12 = vsyncpa [#allocation6 + $0x1], 0 }
   0x4   :  { %13 = vsyncpa [#allocation4], 0 }
   0x5   :  { %15 = vsyncpa [#allocation4 + $0x1], 0  ;;  %s838_s9 = smov 0   ;;  %s840_s10 = smov 0  }
   0x6   :  { %s842_s11 = smov 0   ;;  %s844_s12 = smov 0  }
   0x7   :  { %s846_s13 = smov 0   ;;  %s848_s14 = smov 0  }
   0x8 LB: > { %s539_s15 = sadd.s32 4294967295, %s813_s14   ;;  %s540_s16 = sadd.s32 4294967294, %s813_s14   ;;  %s813_s14 = sphi %s848_s14, %s21_s14   ;;  %s809_s13 = sphi %s846_s13, %s1149_s13   ;;  %s805_s12 = sphi %s844_s12, %s1148_s12   ;;  %s801_s11 = sphi %s842_s11, %s1147_s11   ;;  %s797_s10 = sphi %s840_s10, %s1146_s10   ;;  %s793_s9 = sphi %s838_s9, %s1145_s9  }
   0x9   : > { %s40_s17 = sadd.s32 1, %s809_s13  ;;  %s55_s18 = sadd.s32 1, %s801_s11 }
   0xa   : > { %p42_p0 = scmp.ge.s32.totalorder %s40_s17, 2  ;;  %p62_p1 = scmp.ne.s32.totalorder %s801_s11, %s797_s10 }
   0xb   : > { %p63_p2 = scmp.eq.s32.totalorder %s813_s14, 0  ;;  %p68_p3 = scmp.ne.s32.totalorder %s797_s10, %s793_s9 }
   0xc   : > { %s1151_s17 = smov (%p42_p0, %s40_s17), 0  ;;  %p69_p5 = scmp.eq.s32.totalorder %s539_s15, 0 }
   0xd   : > { %p879_p4 = por %p63_p2, %p62_p1  ;;  %s50_s20 = ssub.s32 %s809_s13, %s1151_s17 }
   0xe   : > { %p128_p6 = scmp.eq.s32.totalorder %s539_s15, 1  ;;  %p53_p7 = scmp.eq.s32.totalorder %s50_s20, 0 }
   0xf   : > { %p885_p8 = por %p69_p5, %p68_p3  ;;  %p134_p10 = scmp.eq.s32.totalorder %s540_s16, 1 }
  0x10   : > { %p889_p9 = por %p128_p6, %p62_p1  ;;  %p592_p13 = scmp.lt.s32.totalorder %s813_s14, 2 }
  0x11   : > { %s1135_s21 = scalar_select %p885_p8, 1, 0 }
  0x12   : > { %s1136_s22 = scalar_select %p889_p9, 1, 0 }
  0x13   : > { %s894_s23 = scalar_select %p53_p7, %s801_s11, %s55_s18  }
  0x14   : > { %p896_p11 = por %p134_p10, %p68_p3  ;;  %s903_s25 = sand.u32 1, %s801_s11  }
  0x15   : > { %s543_s26 = sshll.u32 %s903_s25, 6  ;;  %s571_s27 = sshll.u32 %s809_s13, 10 }
  0x16   : > { %s1137_s24 = scalar_select %p896_p11, 1, 0 }
  0x17   : > { %s910_s30 = scalar_lea.hbm %s1129_s0, %s571_s27  ;;  %s158_s3 = scalar_lea.vmem [#allocation2], %s543_s26 }
  0x18   : > { %s170_s4 = sshll.u32 %s158_s3, 4  ;;  %p916_p0 = pnand %p592_p13, %p879_p4  ;;  %s912_s4 = int_to_ptr.vmem [resolvable:$true] %s170_s4 }
  0x19   : > { %s155_s6 = scalar_lea.sflag [#allocation3], %s903_s25  ;;  %s667_s7 = scalar_lea.hbm %s910_s30, 1024 }
  0x1a   : > { %p668_p2 = scmp.ne.s32.totalorder %s910_s30, %s667_s7  ;;  %p669_p3 = pneg %p916_p0 }
  0x1b   : > { %s672_s16 = scalar_lea.hbm %s1129_s0, 2048  ;;  %p673_p4 = scmp.lt.u32.totalorder %s910_s30, %s1129_s0 }
  0x1c   : > { %p670_p5 = pnand %p669_p3, %p668_p2  ;;  %p674_p7 = scmp.lt.u32.totalorder %s672_s16, %s667_s7 }
  0x1d   : > { %p676_p13 = scmp.lt.u32.totalorder %s667_s7, %s910_s30 }
  0x1e   : > { %p671_p6 = pneg %p670_p5  ;;  %p675_p10 = por %p674_p7, %p673_p4 }
  0x20   : > { %p677_p12 = por %p676_p13, %p675_p10 }
  0x22   : > { %p678_p1 = pnand %p677_p12, %p671_p6 }
  0x24   : > { %681 = shalt.err (!%p678_p1)
}
  0x25   : > { %s682_s20 = scalar_lea.vmem %s912_s4, 1024  ;;  %s815_s26 = smov [#allocation2]  }
  0x26   : > { %p683_p2 = scmp.ne.s32.totalorder %s912_s4, %s682_s20  ;;  %s687_s27 = sshll.u32 %s815_s26, 4  ;;  %s688_s27 = int_to_ptr.vmem [resolvable:$false] %s687_s27 }
  0x27   : > { %s689_s28 = scalar_lea.vmem %s688_s27, 2048  ;;  %p690_p9 = scmp.lt.s32.totalorder %s912_s4, %s688_s27 }
  0x28   : > { %p685_p5 = pnand %p683_p2, %p669_p3  ;;  %p691_p4 = scmp.lt.s32.totalorder %s689_s28, %s682_s20 }
  0x2a   : > { %p686_p11 = pneg %p685_p5  ;;  %p692_p7 = por %p691_p4, %p690_p9 }
  0x2c   : > { %p693_p10 = pnand %p692_p7, %p686_p11 }
  0x2e   : > { %696 = shalt.err (!%p693_p10)
}
  0x2f   : > { %s816_s29 = smov 128   ;;  %s817_s3 = smov 8  }
  0x30   : > { %584 = dma.hbm_to_vmem [thread:$0]  (!%p916_p0), %s910_s30, 1024, %s912_s4, %s155_s6, %s816_s29, %s816_s29, %s817_s3  }
  0x31   : > { %p204_p9 = scmp.lt.s32.totalorder %s813_s14, 3  ;;  %s546_s7 = sshll.u32 %s903_s25, 4 }
  0x32   : > { %s572_s8 = sshll.u32 %s809_s13, 8  ;;  %p1139_p11 = scmp.ge.s32.totalorder %s813_s14, 1 }
  0x33   : > { %s964_s19 = scalar_lea.hbm %s1130_s1, %s572_s8  ;;  %s184_s20 = scalar_lea.vmem [#allocation5], %s546_s7 }
  0x34   : > { %p957_p12 = pnand %p1139_p11, %p204_p9  ;;  %s196_s26 = sshll.u32 %s184_s20, 4  ;;  %s966_s26 = int_to_ptr.vmem [resolvable:$true] %s196_s26 }
  0x35   : > { %s181_s30 = scalar_lea.sflag [#allocation6], %s903_s25  ;;  %s697_s4 = scalar_lea.hbm %s964_s19, 256 }
  0x36   : > { %p698_p1 = scmp.ne.s32.totalorder %s964_s19, %s697_s4  ;;  %s702_s28 = scalar_lea.hbm %s1130_s1, 512 }
  0x37   : > { %p703_p2 = scmp.lt.u32.totalorder %s964_s19, %s1130_s1  ;;  %p704_p5 = scmp.lt.u32.totalorder %s702_s28, %s697_s4 }
  0x38   : > { %p700_p6 = pnand %p698_p1, %p669_p3  ;;  %p706_p7 = scmp.lt.u32.totalorder %s697_s4, %s964_s19 }
  0x39   : > { %p705_p4 = por %p704_p5, %p703_p2 }
  0x3a   : > { %p701_p13 = pneg %p700_p6 }
  0x3b   : > { %p707_p10 = por %p706_p7, %p705_p4 }
  0x3d   : > { %p708_p9 = pnand %p707_p10, %p701_p13 }
  0x3f   : > { %711 = shalt.err (!%p708_p9)
}
  0x40   : > { %s712_s7 = scalar_lea.vmem %s966_s26, 256  ;;  %s818_s18 = smov [#allocation5]  }
  0x41   : > { %p713_p11 = scmp.ne.s32.totalorder %s966_s26, %s712_s7  ;;  %s717_s20 = sshll.u32 %s818_s18, 4  ;;  %s718_s20 = int_to_ptr.vmem [resolvable:$false] %s717_s20 }
  0x42   : > { %s719_s6 = scalar_lea.vmem %s718_s20, 512  ;;  %p720_p8 = scmp.lt.s32.totalorder %s966_s26, %s718_s20 }
  0x43   : > { %p715_p1 = pnand %p713_p11, %p669_p3  ;;  %p721_p2 = scmp.lt.s32.totalorder %s719_s6, %s712_s7 }
  0x45   : > { %p716_p6 = pneg %p715_p1  ;;  %p722_p5 = por %p721_p2, %p720_p8 }
  0x47   : > { %p723_p4 = pnand %p722_p5, %p716_p6 }
  0x49   : > { %726 = shalt.err (!%p723_p4)
}
  0x4a   : > { %587 = dma.hbm_to_vmem [thread:$0]  (!%p916_p0), %s964_s19, 256, %s966_s26, %s181_s30, %s816_s29, %s816_s29, %s817_s3  }
  0x4b   : > { %208 = sbr.rel (%p957_p12) target bundleno = 157 (0x9d), region = 28  ;;  %s1000_s4 = sand.u32 (!%p957_p12), 1, %s797_s10  }
  0x4c   : > { %s550_s27 = sshll.u32 (!%p957_p12), %s1000_s4, 6  ;;  %s211_s28 = scalar_lea.sflag (!%p957_p12), [#allocation3], %s1000_s4 }
  0x4d   : > { %s214_s5 = scalar_lea.vmem (!%p957_p12), [#allocation2], %s550_s27  ;;  %p1141_p8 = scmp.ne.s32.totalorder (!%p957_p12), %s1135_s21, 0 }
  0x52   : > { %780 = dma.done.wait (%p1141_p8), %s211_s28, 1024  }
  0x53   : > { %782 = vsyncadd (%p1141_p8), %s211_s28, 4294966272  ;;  %s551_s25 = sshll.u32 %s1000_s4, 4  ;;  %s220_s29 = scalar_lea.sflag [#allocation6], %s1000_s4 }
  0x54   : > { %s223_s3 = scalar_lea.vmem [#allocation5], %s551_s25 }
  0x55   : > { %784 = dma.done.wait (%p1141_p8), %s220_s29, 256  }
  0x56   : > { %786 = vsyncadd (%p1141_p8), %s220_s29, 4294967040  ;;  %v274_v0 = vld [vmem:[%s214_s5] sm:$0xff]  ;;  %v275_v1 = vld [vmem:[%s214_s5 + $0x8] sm:$0xff]  ;;  %s573_s21 = smul.u32 96, %s1000_s4  ;;  %v819_v16 = vmov 0.0   ;;  %p1142_p3 = scmp.ne.s32.totalorder %s1136_s22, 0 }
  0x57   : > { %v276_v2 = vld [vmem:[%s214_s5 + $0x10] sm:$0xff]  ;;  %v277_v3 = vld [vmem:[%s214_s5 + $0x18] sm:$0xff]  ;;  %v278_v4 = vld [vmem:[%s214_s5 + $0x20] sm:$0xff]  ;;  %s574_s19 = smul.u32 1536, %s805_s12  ;;  %s411_s12 = scalar_lea.sflag [#allocation4], %s1000_s4 }
  0x58   : > { %v279_v5 = vld [vmem:[%s214_s5 + $0x28] sm:$0xff]  ;;  %v280_v6 = vld [vmem:[%s214_s5 + $0x30] sm:$0xff]  ;;  %v281_v7 = vld [vmem:[%s214_s5 + $0x38] sm:$0xff]  ;;  %v284_v9 = vmax.f32 %v274_v0, %v278_v4  ;;  %s1039_s15 = scalar_lea.vmem [#allocation7], %s573_s21  ;;  %s820_s18 = smov [#allocation7]  }
  0x59   : > { %v1014_v8 = vld [vmem:[%s223_s3] sm:$0xff]  ;;  %v287_v10 = vmax.f32 %v275_v1, %v279_v5  ;;  %v1016_v11 = vld [vmem:[%s223_s3 + $0x8] sm:$0xff]  ;;  %v285_v12 = vmax.f32 %v276_v2, %v280_v6  ;;  %v288_v13 = vmax.f32 %v277_v3, %v281_v7  ;;  %s425_s26 = sshll.u32 %s1039_s15, 4  ;;  %s1070_s16 = scalar_lea.hbm %s1131_s2, %s574_s19  ;;  %s1072_s26 = int_to_ptr.vmem [resolvable:$true] %s425_s26 }
  0x5a   : > { %vm336_vm0 = vcmp.eq.s32.totalorder %v1014_v8, 0  ;;  %vm338_vm1 = vcmp.eq.s32.totalorder %v1014_v8, 1  ;;  %vm337_vm2 = vcmp.eq.s32.totalorder %v1016_v11, 0  ;;  %vm339_vm3 = vcmp.eq.s32.totalorder %v1016_v11, 1  ;;  %s727_s7 = scalar_lea.vmem %s1072_s26, 1536  ;;  %s731_s20 = sshll.u32 %s820_s18, 4  ;;  %s732_s20 = int_to_ptr.vmem [resolvable:$false] %s731_s20 }
  0x5b   : > { %vm340_vm4 = vcmp.eq.s32.totalorder %v1014_v8, 2  ;;  %v286_v14 = vmax.f32 %v284_v9, %v285_v12  ;;  %v289_v15 = vmax.f32 %v287_v10, %v288_v13  ;;  %vm341_vm5 = vcmp.eq.s32.totalorder %v1016_v11, 2  ;;  %p728_p0 = scmp.ne.s32.totalorder %s1072_s26, %s727_s7  ;;  %s733_s6 = scalar_lea.vmem %s732_s20, 3072 }
  0x5c   : > { %vm342_vm6 = vcmp.eq.s32.totalorder %v1014_v8, 3  ;;  %v390_v17 = vsel %vm336_vm0, 1.0, %v819_v16  ;;  %v391_v18 = vsel %vm337_vm2, 1.0, %v819_v16  ;;  %v392_v19 = vsel %vm338_vm1, 1.0, %v819_v16  ;;  %p734_p7 = scmp.lt.s32.totalorder %s1072_s26, %s732_s20  ;;  %p735_p10 = scmp.lt.s32.totalorder %s733_s6, %s727_s7 }
  0x5d   : > { %v393_v20 = vsel %vm339_vm3, 1.0, %v819_v16  ;;  %v290_v21 = vsub.f32 %v274_v0, %v286_v14  ;;  %v291_v22 = vsub.f32 %v275_v1, %v289_v15  ;;  %v292_v23 = vsub.f32 %v276_v2, %v286_v14  ;;  %p729_p12 = pnand %p728_p0, %p1142_p3 }
  0x5e   : > { %v293_v24 = vsub.f32 %v277_v3, %v289_v15  ;;  %v294_v25 = vsub.f32 %v278_v4, %v286_v14  ;;  %v295_v26 = vsub.f32 %v279_v5, %v289_v15  ;;  %v296_v27 = vsub.f32 %v280_v6, %v286_v14  ;;  %p736_p9 = por %p735_p10, %p734_p7 }
  0x5f   : > { %vm343_vm7 = vcmp.eq.s32.totalorder %v1016_v11, 3  ;;  %v298_v28 = vmul.f32 1.442695, %v290_v21  ;;  %v300_v29 = vmul.f32 1.442695, %v291_v22  ;;  %v398_v31 = vadd.f32 %v391_v18, %v390_v17  ;;  %p730_p13 = pneg %p729_p12 }
  0x60   : > { %v302_v30 = vmul.f32 1.442695, %v292_v23  ;;  %v297_v32 = vsub.f32 %v281_v7, %v289_v15  ;;  %v304_v33 = vmul.f32 1.442695, %v293_v24  ;;  %v306_v34 = vmul.f32 1.442695, %v294_v25 }
  0x61   : > { %v399_v35 = vadd.f32 %v393_v20, %v392_v19  ;;  %647 = vpow2.f32 %v298_v28  ;;  %v308_v36 = vmul.f32 1.442695, %v295_v26  ;;  %v310_v37 = vmul.f32 1.442695, %v296_v27  ;;  %564 = vst [vmem:[%s1039_s15 + $0x40] sm:$0xff] %v398_v31  ;;  %p737_p11 = pnand %p736_p9, %p730_p13 }
  0x62   : > { %649 = vpow2.f32 %v300_v29  ;;  %v394_v38 = vsel %vm340_vm4, 1.0, %v819_v16  ;;  %v395_v39 = vsel %vm341_vm5, 1.0, %v819_v16  ;;  %v396_v41 = vsel %vm342_vm6, 1.0, %v819_v16 }
  0x63   : > { %651 = vpow2.f32 %v302_v30  ;;  %v400_v40 = vadd.f32 %v395_v39, %v394_v38  ;;  %v397_v42 = vsel %vm343_vm7, 1.0, %v819_v16  ;;  %v312_v43 = vmul.f32 1.442695, %v297_v32  ;;  %565 = vst [vmem:[%s1039_s15 + $0x48] sm:$0xff] %v399_v35 }
  0x64   : > { %653 = vpow2.f32 %v304_v33  ;;  %v401_v44 = vadd.f32 %v397_v42, %v396_v41 }
  0x65   : > { %655 = vpow2.f32 %v306_v34  ;;  %566 = vst [vmem:[%s1039_s15 + $0x50] sm:$0xff] %v400_v40 }
  0x66   : > { %657 = vpow2.f32 %v308_v36  ;;  %567 = vst [vmem:[%s1039_s15 + $0x58] sm:$0xff] %v401_v44 }
  0x67   : > { %659 = vpow2.f32 %v310_v37 }
  0x68   : > { %661 = vpow2.f32 %v312_v43 }
  0x6b   : > { %v648_v45 = vpop.eup %647 }
  0x6c   : > { %v650_v46 = vpop.eup %649 }
  0x6d   : > { %v652_v47 = vpop.eup %651 }
  0x6e   : > { %v654_v48 = vpop.eup %653  ;;  %v314_v49 = vadd.f32 %v652_v47, %v648_v45 }
  0x6f   : > { %v656_v50 = vpop.eup %655  ;;  %v317_v51 = vadd.f32 %v654_v48, %v650_v46 }
  0x70   : > { %v658_v52 = vpop.eup %657  ;;  %v315_v53 = vadd.f32 %v656_v50, %v314_v49 }
  0x71   : > { %v660_v54 = vpop.eup %659  ;;  %v318_v55 = vadd.f32 %v658_v52, %v317_v51 }
  0x72   : > { %v662_v56 = vpop.eup %661  ;;  %v316_v57 = vadd.f32 %v660_v54, %v315_v53 }
  0x73   : > { %v319_v58 = vadd.f32 %v662_v56, %v318_v55 }
  0x74   : > { %663 = vrcp.f32 %v316_v57 }
  0x75   : > { %665 = vrcp.f32 %v319_v58 }
  0x7e   : > { %v664_v59 = vpop.eup %663 }
  0x7f   : > { %v666_v60 = vpop.eup %665  ;;  %v322_v61 = vmul.f32 %v664_v59, %v316_v57 }
  0x80   : > { %v323_v62 = vmul.f32 %v666_v60, %v319_v58 }
  0x81   : > { %v324_v63 = vsub.f32 2.0, %v322_v61 }
  0x82   : > { %v325_v0 = vsub.f32 2.0, %v323_v62 }
  0x83   : > { %v326_v1 = vmul.f32 %v664_v59, %v324_v63 }
  0x84   : > { %v327_v2 = vmul.f32 %v666_v60, %v325_v0 }
  0x85   : > { %v328_v3 = vmul.f32 %v648_v45, %v326_v1  ;;  %v330_v4 = vmul.f32 %v652_v47, %v326_v1  ;;  %v332_v5 = vmul.f32 %v656_v50, %v326_v1  ;;  %v334_v6 = vmul.f32 %v660_v54, %v326_v1 }
  0x86   : > { %v329_v7 = vmul.f32 %v650_v46, %v327_v2  ;;  %v331_v9 = vmul.f32 %v654_v48, %v327_v2  ;;  %v333_v10 = vmul.f32 %v658_v52, %v327_v2  ;;  %v335_v12 = vmul.f32 %v662_v56, %v327_v2 }
  0x87   : > { %v348_v13 = vsel %vm336_vm0, %v328_v3, 0.0  ;;  %v350_v14 = vsel %vm338_vm1, %v330_v4, 0.0  ;;  %v352_v15 = vsel %vm340_vm4, %v332_v5, 0.0  ;;  %v354_v16 = vsel %vm342_vm6, %v334_v6, 0.0 }
  0x88   : > { %v349_v17 = vsel %vm337_vm2, %v329_v7, 0.0  ;;  %v351_v18 = vsel %vm339_vm3, %v331_v9, 0.0  ;;  %v353_v19 = vsel %vm341_vm5, %v333_v10, 0.0  ;;  %v355_v20 = vsel %vm343_vm7, %v335_v12, 0.0 }
  0x89   : > { %v356_v8 = vadd.f32 %v349_v17, %v348_v13  ;;  %v357_v21 = vadd.f32 %v351_v18, %v350_v14  ;;  %v358_v22 = vadd.f32 %v353_v19, %v352_v15  ;;  %v359_v23 = vadd.f32 %v355_v20, %v354_v16 }
  0x8a   : > { %v373_v24 = vadd.f32 %v329_v7, %v328_v3  ;;  %v374_v25 = vadd.f32 %v331_v9, %v330_v4  ;;  %v375_v26 = vadd.f32 %v333_v10, %v332_v5  ;;  %v376_v27 = vadd.f32 %v335_v12, %v334_v6 }
  0x8b   : > { %364 = vst [vmem:[%s1039_s15] sm:$0xff] %v356_v8  ;;  %365 = vst [vmem:[%s1039_s15 + $0x8] sm:$0xff] %v357_v21 }
  0x8c   : > { %366 = vst [vmem:[%s1039_s15 + $0x10] sm:$0xff] %v358_v22  ;;  %367 = vst [vmem:[%s1039_s15 + $0x18] sm:$0xff] %v359_v23 }
  0x8d   : > { %556 = vst [vmem:[%s1039_s15 + $0x20] sm:$0xff] %v373_v24  ;;  %557 = vst [vmem:[%s1039_s15 + $0x28] sm:$0xff] %v374_v25 }
  0x8e   : > { %558 = vst [vmem:[%s1039_s15 + $0x30] sm:$0xff] %v375_v26  ;;  %559 = vst [vmem:[%s1039_s15 + $0x38] sm:$0xff] %v376_v27 }
  0x8f   : > { %740 = shalt.err (!%p737_p11)
}
  0x90   : > { %s741_s27 = scalar_lea.hbm %s1070_s16, 1536  ;;  %s745_s25 = scalar_lea.hbm %s1131_s2, 3072 }
  0x91   : > { %p742_p1 = scmp.ne.s32.totalorder %s1070_s16, %s741_s27  ;;  %p746_p5 = scmp.lt.u32.totalorder %s1070_s16, %s1131_s2 }
  0x92   : > { %p747_p4 = scmp.lt.u32.totalorder %s745_s25, %s741_s27  ;;  %p749_p0 = scmp.lt.u32.totalorder %s741_s27, %s1070_s16 }
  0x93   : > { %p743_p6 = pnand %p742_p1, %p1142_p3 }
  0x94   : > { %p748_p8 = por %p747_p4, %p746_p5 }
  0x95   : > { %p744_p2 = pneg %p743_p6 }
  0x96   : > { %p750_p12 = por %p749_p0, %p748_p8 }
  0x98   : > { %p751_p13 = pnand %p750_p12, %p744_p2 }
  0x9a   : > { %754 = shalt.err (!%p751_p13)
}
  0x9b   : > { %s821_s21 = smov 128   ;;  %s822_s15 = smov 8  }
  0x9c   : > { %579 = dma.vmem_to_hbm [thread:$0]  (%p1142_p3), %s1072_s26, 1536, %s1070_s16, %s411_s12, %s821_s21, %s821_s21, %s822_s15  }
  0x9d PF: > { %s440_s19 = sand.u32 1, %s793_s9   ;;  %p1143_p7 = scmp.ne.s32.totalorder %s1137_s24, 0 }
  0x9e   : > { %p1144_p10 = scmp.ge.s32.totalorder %s813_s14, 2  ;;  %s441_s30 = scalar_lea.sflag [#allocation4], %s440_s19 }
  0xa0   : > { %p589_p9 = pnand %p1144_p10, %p1143_p7 }
  0xa2   : > { %788 = dma.done.wait (!%p589_p9), %s441_s30, 1536  }
  0xa3   : > { %790 = vsyncadd (!%p589_p9), %s441_s30, 4294965760  ;;  %s21_s14 = sadd.s32 1, %s813_s14   ;;  %s1145_s9 = smov %s797_s10 }
  0xa4   : > { %p18_p11 = scmp.ge.s32.totalorder %s21_s14, 4   ;;  %s1146_s10 = smov %s801_s11 }
  0xa5   : > { %s1147_s11 = smov %s894_s23  ;;  %s1148_s12 = smov %s809_s13 }
  0xa6   : > { %s1149_s13 = smov %s1151_s17  ;;  %20 = sbr.rel (!%p18_p11) target bundleno = 8 (0x8), region = 92 }
  0xad   :  { %446 = vsyncpa [#allocation3], 1 }
  0xae   :  { %448 = vsyncpa [#allocation3 + $0x1], 1 }
  0xaf   :  { %449 = vsyncpa [#allocation6], 1 }
  0xb0   :  { %451 = vsyncpa [#allocation6 + $0x1], 1 }
  0xb1   :  { %452 = vsyncpa [#allocation4], 1 }
  0xb2   :  { %454 = vsyncpa [#allocation4 + $0x1], 1 }

</bundles_post_ra>
